<compile_context>
chip_gen: v5e
topology: v5e:2x2
jax: 0.10.0
libtpu: 0.0.40
codegen_flags: <defaults>
</compile_context>

<pallas_src>
import jax
import jax.numpy as jnp
from jax import lax
from jax.experimental import pallas as pl
from jax.experimental.pallas import tpu as pltpu

NEG_SLOPE = 0.01            # F.leaky_relu_ default
BN_EPS = 1e-5               # torch BatchNorm1d default
CPAD = 128                  # every feature dim zero-padded to one full lane width
TG = 8                      # graphs per pooled-output tile (one sublane group)


def _vmem_budget():
    """Generation-aware scoped-VMEM limit (48 MiB on v7x's 64 MiB, 96 MiB on v5e/v6e)."""
    try:
        cap = int(pltpu.get_tpu_info().vmem_capacity_bytes)
    except Exception:
        cap = 64 * 1024 * 1024
    return min((cap * 3) // 4, 96 * 1024 * 1024)


VMEM_LIMIT = _vmem_budget()
_VMEM_SPEC = pl.BlockSpec(memory_space=pltpu.MemorySpace.VMEM)  # whole array in VMEM


# ----------------------------------------------------------------------------
# helpers
# ----------------------------------------------------------------------------
def _round_up(x, m):
    return (x + m - 1) // m * m


def _choose_tiles(n):
    """Row / reduction tile sizes for the dense A_hat aggregation (HBM-bound)."""
    if n <= 512:
        n_pad = _round_up(max(n, 16), 16)
        return n_pad, n_pad, n_pad            # single full-array tile
    if n >= 4096:
        t = 1024                              # big tiles: ~86% of HBM roofline
    elif n >= 2048:
        t = 512
    else:
        t = 256                               # keep >= 4 row tiles for v7x megacore
    n_pad = _round_up(n, t)
    return n_pad, t, t


def _pad2(w, rows=CPAD, cols=CPAD):
    r, c = w.shape
    return jnp.pad(w, ((0, rows - r), (0, cols - c)))


def _pad1(b, cols=CPAD):
    return jnp.pad(b, (0, cols - b.shape[0])).reshape(1, cols)


# ----------------------------------------------------------------------------
# Kernel 1: fused GCN layer   out = leaky_relu(A_hat @ (X @ W) + b)
#   grid = (row tiles, reduction tiles); W resident; X resident or streamed per k-tile;
#   f32 VMEM accumulator with pl.when init/finalize; bf16 lane-dense output.
# ----------------------------------------------------------------------------
def _make_gcn_kernel(x_resident, tk):
    def kernel(a_ref, x_ref, w_ref, b_ref, o_ref, acc_ref):
        k = pl.program_id(1)

        @pl.when(k == 0)
        def _():
            acc_ref[...] = jnp.zeros_like(acc_ref)

        if x_resident:
            off = pl.multiple_of(k * tk, tk)
            x_tile = x_ref[pl.ds(off, tk), :]
        else:
            x_tile = x_ref[...]

        # projection fused into the reduction loop (W stays resident in VMEM)
        xw = jnp.dot(x_tile, w_ref[...], preferred_element_type=jnp.float32)
        acc_ref[...] += jnp.dot(a_ref[...], xw.astype(jnp.bfloat16),
                                preferred_element_type=jnp.float32)

        @pl.when(k == pl.num_programs(1) - 1)
        def _():
            h = acc_ref[...] + b_ref[...]
            o_ref[...] = jnp.where(h > 0, h, NEG_SLOPE * h).astype(o_ref.dtype)

    return kernel


def gcn_layer(a_bf16, x_bf16, w_bf16, b2d, tm, tk, out_dtype=jnp.bfloat16):
    """leaky_relu(A_hat @ (X @ W) + b) with the projection fused into the k-loop."""
    n_pad = a_bf16.shape[0]
    # X resident iff its (double-buffered) bf16 copy fits comfortably next to A tiles.
    x_resident = 2 * n_pad * CPAD * 2 <= VMEM_LIMIT // 4

    if x_resident:
        x_spec = pl.BlockSpec((n_pad, CPAD), lambda i, k: (0, 0))   # DMA'd once, resident
    else:
        x_spec = pl.BlockSpec((tk, CPAD), lambda i, k: (k, 0))      # streamed per k-tile

    return pl.pallas_call(
        _make_gcn_kernel(x_resident, tk),
        out_shape=jax.ShapeDtypeStruct((n_pad, CPAD), out_dtype),
        grid_spec=pltpu.PrefetchScalarGridSpec(
            num_scalar_prefetch=0,
            grid=(n_pad // tm, n_pad // tk),
            in_specs=[pl.BlockSpec((tm, tk), lambda i, k: (i, k)),      # A_hat tile
                      x_spec,                                           # X (resident/stream)
                      pl.BlockSpec((CPAD, CPAD), lambda i, k: (0, 0)),  # W resident
                      pl.BlockSpec((1, CPAD), lambda i, k: (0, 0))],    # bias
            out_specs=pl.BlockSpec((tm, CPAD), lambda i, k: (i, 0)),
            scratch_shapes=[pltpu.VMEM((tm, CPAD), jnp.float32)]),
        compiler_params=pltpu.CompilerParams(
            dimension_semantics=("parallel", "arbitrary"),
            vmem_limit_bytes=VMEM_LIMIT),
    )(a_bf16, x_bf16, w_bf16, b2d)


# ----------------------------------------------------------------------------
# Kernel 2: global_max_pool over contiguous (PyG-style sorted) segments.
#   grid = (graph tiles of TG=8, node tiles); scalar-prefetched [lo, hi] node-tile bounds
#   per graph tile (computed on device); clamped index_map => out-of-range steps do no DMA;
#   @pl.when guard => they do no compute.  bf16 h input, f32 (8,128) accumulator, one
#   lane-dense store per graph tile.
# ----------------------------------------------------------------------------
def _pool_kernel(lo_ref, hi_ref, bid_ref, h_ref, o_ref, acc_ref):
    gt = pl.program_id(0)
    j = pl.program_id(1)

    @pl.when(j == 0)
    def _():
        acc_ref[...] = jnp.full((TG, CPAD), -jnp.inf, jnp.float32)

    @pl.when((j >= lo_ref[gt]) & (j <= hi_ref[gt]))
    def _():
        bids = bid_ref[...]                         # (tm, 1) int32
        h = h_ref[...].astype(jnp.float32)          # (tm, CPAD)
        base = gt * TG
        for t in range(TG):                         # per-row accumulator update (no concat)
            masked = jnp.where(bids == base + t, h, -jnp.inf)
            part = jnp.max(masked, axis=0, keepdims=True)           # (1, CPAD)
            acc_ref[pl.ds(t, 1), :] = jnp.maximum(acc_ref[pl.ds(t, 1), :], part)

    @pl.when(j == pl.num_programs(1) - 1)
    def _():
        acc = acc_ref[...]
        o_ref[...] = jnp.where(acc == -jnp.inf, 0.0, acc)   # empty/padded graphs -> 0


def segment_max_pool(h_bf16, batch, num_graphs, tm):
    """h_bf16: [n_pad, CPAD], batch: [N] sorted graph ids (PyG Batch convention)."""
    n_pad = h_bf16.shape[0]
    n = batch.shape[0]
    n_tiles = n_pad // tm
    g_pad = _round_up(max(num_graphs, 1), TG)
    g_tiles = g_pad // TG

    # per graph-tile node-tile bounds, computed on device (jit-friendly, no host sync)
    batch_i32 = batch.astype(jnp.int32)
    starts = jnp.arange(g_tiles, dtype=jnp.int32) * TG
    node_lo = jnp.searchsorted(batch_i32, starts, side="left").astype(jnp.int32)
    node_hi = jnp.searchsorted(batch_i32, starts + TG, side="left").astype(jnp.int32) - 1
    tile_lo = jnp.clip(node_lo // tm, 0, n_tiles - 1).astype(jnp.int32)
    tile_hi = jnp.clip(node_hi // tm, 0, n_tiles - 1).astype(jnp.int32)

    bid_col = jnp.pad(batch_i32, (0, n_pad - n), constant_values=-1).reshape(n_pad, 1)

    def in_map(gt, j, lo_ref, hi_ref):
        lo = lo_ref[gt]
        hi = jnp.maximum(hi_ref[gt], lo)
        return (jnp.clip(j, lo, hi), 0)             # clamp -> repeated block, no re-DMA

    def out_map(gt, j, lo_ref, hi_ref):
        return (gt, 0)

    pooled = pl.pallas_call(
        _pool_kernel,
        out_shape=jax.ShapeDtypeStruct((g_pad, CPAD), jnp.float32),
        grid_spec=pltpu.PrefetchScalarGridSpec(
            num_scalar_prefetch=2,
            grid=(g_tiles, n_tiles),
            in_specs=[pl.BlockSpec((tm, 1), in_map),
                      pl.BlockSpec((tm, CPAD), in_map)],
            out_specs=pl.BlockSpec((TG, CPAD), out_map),
            scratch_shapes=[pltpu.VMEM((TG, CPAD), jnp.float32)]),
        compiler_params=pltpu.CompilerParams(
            dimension_semantics=("parallel", "arbitrary"),
            vmem_limit_bytes=VMEM_LIMIT),
    )(tile_lo, tile_hi, bid_col, h_bf16)
    return pooled[:num_graphs]


# ----------------------------------------------------------------------------
# Kernel 3: fused outer path on the tiny [G, *] statement graph:
#   2 x (GCN -> leaky_relu -> BatchNorm(batch stats)) -> one-hot index_select -> sigmoid MLP
# TODO(synk): add a tiled fallback (reuse gcn_layer) when G*G*4 bytes no longer fits VMEM.
# ----------------------------------------------------------------------------
def _outer_head_kernel(a_ref, x_ref, w0_ref, b0_ref, g0_ref, be0_ref,
                       w1_ref, b1_ref, g1_ref, be1_ref,
                       sel_ref, mw_ref, mb_ref, hsel_ref, out_ref):
    a = a_ref[...]
    inv_n = 1.0 / a.shape[0]

    def gcn_leaky_bn(x, w, b, gam, bet):
        xw = jnp.dot(x, w, preferred_element_type=jnp.float32)
        h = jnp.dot(a, xw, preferred_element_type=jnp.float32) + b
        h = jnp.where(h > 0, h, NEG_SLOPE * h)
        # single-pass batch-norm statistics (biased variance, training mode)
        s1 = jnp.sum(h, axis=0, keepdims=True)
        s2 = jnp.sum(h * h, axis=0, keepdims=True)
        mean = s1 * inv_n
        var = jnp.maximum(s2 * inv_n - mean * mean, 0.0)
        return gam * (h - mean) * lax.rsqrt(var + BN_EPS) + bet

    h = gcn_leaky_bn(x_ref[...], w0_ref[...], b0_ref[...], g0_ref[...], be0_ref[...])
    h = gcn_leaky_bn(h, w1_ref[...], b1_ref[...], g1_ref[...], be1_ref[...])

    h_sel = jnp.dot(sel_ref[...], h, preferred_element_type=jnp.float32)  # index_select
    hsel_ref[...] = h_sel

    z = jnp.dot(h_sel, mw_ref[...], preferred_element_type=jnp.float32) + mb_ref[...]
    out_ref[...] = 1.0 / (1.0 + jnp.exp(-z))                              # exact sigmoid


def outer_head(a_out, x, w0, b0, g0, be0, w1, b1, g1, be1, sel, mw, mb):
    k = sel.shape[0]
    return pl.pallas_call(
        _outer_head_kernel,
        out_shape=(jax.ShapeDtypeStruct((k, CPAD), jnp.float32),
                   jax.ShapeDtypeStruct((k, CPAD), jnp.float32)),
        in_specs=[_VMEM_SPEC] * 13,
        out_specs=(_VMEM_SPEC, _VMEM_SPEC),
        compiler_params=pltpu.CompilerParams(vmem_limit_bytes=VMEM_LIMIT),
    )(a_out, x, w0, b0, g0, be0, w1, b1, g1, be1, sel, mw, mb)


# ----------------------------------------------------------------------------
# Plain-JAX glue: dense normalized adjacency  D^-1/2 (A + I) D^-1/2  (PyG gcn_norm)
# ----------------------------------------------------------------------------
def gcn_norm_dense(edge_index, n_pad):
    src = edge_index[0].astype(jnp.int32)
    dst = edge_index[1].astype(jnp.int32)
    a = jnp.zeros((n_pad, n_pad), jnp.float32).at[dst, src].add(1.0)
    a = a + jnp.eye(n_pad, dtype=jnp.float32)          # add self loops
    deg = jnp.sum(a, axis=1)
    d_inv_sqrt = jnp.where(deg > 0, lax.rsqrt(deg), 0.0)
    return d_inv_sqrt[:, None] * a * d_inv_sqrt[None, :]


# ----------------------------------------------------------------------------
# Forward pass (mirrors MyNestingOutGCN.forward)
# ----------------------------------------------------------------------------
def forward(params, astss, data):
    # ----- MyInGCN encoder over the inner (AST) graphs -----
    x = astss["x"]                                         # [N_inner, 128]
    n = x.shape[0]
    num_graphs = int(astss["num_graphs"])

    n_pad, tm, tk = _choose_tiles(n)
    x_p = jnp.pad(x, ((0, n_pad - n), (0, CPAD - x.shape[1]))).astype(jnp.bfloat16)
    a_in = gcn_norm_dense(astss["edge_index"], n_pad).astype(jnp.bfloat16)

    enc_w0 = _pad2(params["enc_w0"]).astype(jnp.bfloat16)
    enc_b0 = _pad1(params["enc_b0"])
    enc_w1 = _pad2(params["enc_w1"]).astype(jnp.bfloat16)
    enc_b1 = _pad1(params["enc_b1"])

    h = gcn_layer(a_in, x_p, enc_w0, enc_b0, tm, tk)       # leaky(A (X W0) + b0), bf16 out
    h = gcn_layer(a_in, h, enc_w1, enc_b1, tm, tk)         # leaky(A (H W1) + b1), bf16 out
    statements_vec = segment_max_pool(h, astss["batch"], num_graphs, tm)   # [G, 128] f32
    # (encoder.mlp is defined in __init__ but never used in forward -> omitted)

    # ----- outer statement graph + head (fused tiny kernel) -----
    g = int(data["num_nodes"])
    a_out = gcn_norm_dense(data["edge_index"], g)          # [G, G] f32
    idx = data["idx"]
    # TODO(synk): idx2index() is not defined in the reference source; `idx` is treated
    # as the already-resolved node indices for torch.index_select(dim=0).
    sel = (idx[:, None] == jnp.arange(g, dtype=idx.dtype)[None, :]).astype(jnp.float32)

    ow0, ob0 = _pad2(params["w0"]), _pad1(params["b0"])
    og0, obe0 = _pad1(params["bn0_gamma"]), _pad1(params["bn0_beta"])
    ow1, ob1 = _pad2(params["w1"]), _pad1(params["b1"])
    og1, obe1 = _pad1(params["bn1_gamma"]), _pad1(params["bn1_beta"])
    mw, mb = _pad2(params["mlp_w"]), _pad1(params["mlp_b"])

    h_sel_p, out_p = outer_head(a_out, statements_vec, ow0, ob0, og0, obe0,
                                ow1, ob1, og1, obe1, sel, mw, mb)
    return h_sel_p[:, :16], out_p[:, :5]


# ----------------------------------------------------------------------------
# Deterministic parameter init (shapes from the module __init__)
# ----------------------------------------------------------------------------
def glorot(key, fan_in, fan_out):
    lim = (6.0 / (fan_in + fan_out)) ** 0.5
    return jax.random.uniform(key, (fan_in, fan_out), jnp.float32, -lim, lim)


def kaiming_uniform(key, fan_in, fan_out):
    lim = (6.0 / fan_in) ** 0.5
    return jax.random.uniform(key, (fan_in, fan_out), jnp.float32, -lim, lim)


def init_params(key):
    ks = jax.random.split(key, 8)
    return {
        # MyInGCN: GCNConv(128,64), GCNConv(64,32)
        "enc_w0": glorot(ks[0], 128, 64), "enc_b0": jnp.zeros((64,), jnp.float32),
        "enc_w1": glorot(ks[1], 64, 32),  "enc_b1": jnp.zeros((32,), jnp.float32),
        # outer: GCNConv(32,32) + BatchNorm(32), GCNConv(32,16) + BatchNorm(16)
        "w0": glorot(ks[2], 32, 32), "b0": jnp.zeros((32,), jnp.float32),
        "bn0_gamma": jnp.ones((32,), jnp.float32), "bn0_beta": jnp.zeros((32,), jnp.float32),
        "w1": glorot(ks[3], 32, 16), "b1": jnp.zeros((16,), jnp.float32),
        "bn1_gamma": jnp.ones((16,), jnp.float32), "bn1_beta": jnp.zeros((16,), jnp.float32),
        # mlp: Linear(16, 5)
        "mlp_w": kaiming_uniform(ks[4], 16, 5),
        "mlp_b": jax.random.uniform(ks[5], (5,), jnp.float32, -0.25, 0.25),
    }


if __name__ == "__main__":
    key = jax.random.PRNGKey(0)
    k_params, k_x = jax.random.split(key)

    # Small deterministic example: 4 inner graphs x 4 nodes each, 4 outer nodes.
    G = 4                      # number of inner graphs == outer-graph nodes
    NODES_PER = 4
    N_INNER = G * NODES_PER    # 16 inner nodes

    # inner (astss) data
    x_inner = jax.random.normal(k_x, (N_INNER, 128), jnp.float32)
    src, dst = [], []
    for g in range(G):         # bidirectional chain inside each inner graph
        base = g * NODES_PER
        for i in range(NODES_PER - 1):
            src += [base + i, base + i + 1]
            dst += [base + i + 1, base + i]
    edge_index_inner = jnp.array([src, dst], dtype=jnp.int32)        # [2, 24]
    batch = jnp.repeat(jnp.arange(G, dtype=jnp.int32), NODES_PER)    # [16] (sorted, PyG-style)

    # outer (data) graph: bidirectional ring over the 4 statement nodes
    edge_index_outer = jnp.array([[0, 1, 1, 2, 2, 3, 3, 0],
                                  [1, 0, 2, 1, 3, 2, 0, 3]], dtype=jnp.int32)   # [2, 8]
    idx = jnp.array([0, 2], dtype=jnp.int32)

    params = init_params(k_params)

    astss = {"x": x_inner, "edge_index": edge_index_inner, "batch": batch, "num_graphs": G}
    data = {"edge_index": edge_index_outer, "idx": idx, "num_nodes": G}

    h_sel, out = forward(params, astss, data)
    (h_sel, out) = jax.block_until_ready((h_sel, out))

    assert h_sel.shape == (2, 16) and out.shape == (2, 5)
    assert bool(jnp.all(jnp.isfinite(h_sel))) and bool(jnp.all((out >= 0) & (out <= 1)))
    print("KERNEL_OK")
</pallas_src>

<mosaic_0001>
module attributes {stable_mosaic.version = 11 : i64} {
  func.func @kernel(%arg0: i32, %arg1: i32, %arg2: memref<16x16xbf16, #tpu.memory_space<vmem>>, %arg3: memref<16x128xbf16, #tpu.memory_space<vmem>>, %arg4: memref<128x128xbf16, #tpu.memory_space<vmem>>, %arg5: memref<1x128xf32, #tpu.memory_space<vmem>>, %arg6: memref<16x128xbf16, #tpu.memory_space<vmem>>, %arg7: memref<16x128xf32, #tpu.memory_space<vmem>>) attributes {dimension_semantics = [#tpu.dimension_semantics<parallel>, #tpu.dimension_semantics<arbitrary>], iteration_bounds = array<i64: 1, 1>, scalar_prefetch = 0 : i64, scratch_operands = 1 : i64, tpu.core_type = #tpu.core_type<tc>, window_params = [{transform_indices = @transform_0, window_bounds = array<i64: 16, 16>}, {pipeline_mode = #tpu.pipeline_mode<synchronous>, transform_indices = @transform_1, window_bounds = array<i64: 16, 128>}, {pipeline_mode = #tpu.pipeline_mode<synchronous>, transform_indices = @transform_2, window_bounds = array<i64: 128, 128>}, {pipeline_mode = #tpu.pipeline_mode<synchronous>, transform_indices = @transform_3, window_bounds = array<i64: 1, 128>}, {transform_indices = @transform_4, window_bounds = array<i64: 16, 128>}]} {
    %c0_i32 = arith.constant 0 : i32
    %0 = arith.cmpi eq, %arg1, %c0_i32 : i32
    %1 = arith.extui %0 : i1 to i32
    %c0_i32_0 = arith.constant 0 : i32
    %2 = arith.cmpi ne, %1, %c0_i32_0 : i32
    scf.if %2 {
      %cst_12 = arith.constant 0.000000e+00 : f32
      %18 = vector.broadcast %cst_12 : f32 to vector<16x128xf32>
      %c0_13 = arith.constant 0 : index
      %c0_14 = arith.constant 0 : index
      %19 = vector.load %arg7[%c0_13, %c0_14] : memref<16x128xf32, #tpu.memory_space<vmem>>, vector<16x128xf32>
      tpu.vector_store %arg7[%c0_13, %c0_14], %18 {strides = array<i32>} : memref<16x128xf32, #tpu.memory_space<vmem>>, vector<16x128xf32>,
    } else {
    }
    %c16_i32 = arith.constant 16 : i32
    %3 = arith.muli %arg1, %c16_i32 : i32
    %4 = tpu.assume_multiple %3, 16 : i32
    %5 = arith.index_cast %4 : i32 to index
    %c0 = arith.constant 0 : index
    %6 = vector.load %arg3[%5, %c0] : memref<16x128xbf16, #tpu.memory_space<vmem>>, vector<16x128xbf16>
    %c0_1 = arith.constant 0 : index
    %c0_2 = arith.constant 0 : index
    %7 = vector.load %arg4[%c0_1, %c0_2] : memref<128x128xbf16, #tpu.memory_space<vmem>>, vector<128x128xbf16>
    %cst = arith.constant dense<0.000000e+00> : vector<16x128xf32>
    %8 = tpu.matmul %6, %7, %cst {dimension_numbers = #tpu.dot_dimension_numbers<[1], [0], [0], [1], [0, 0, 1, 1], [], []>} : vector<16x128xbf16>, vector<128x128xbf16>, vector<16x128xf32> -> vector<16x128xf32>
    %c0_3 = arith.constant 0 : index
    %c0_4 = arith.constant 0 : index
    %9 = vector.load %arg7[%c0_3, %c0_4] : memref<16x128xf32, #tpu.memory_space<vmem>>, vector<16x128xf32>
    %c0_5 = arith.constant 0 : index
    %c0_6 = arith.constant 0 : index
    %10 = vector.load %arg2[%c0_5, %c0_6] : memref<16x16xbf16, #tpu.memory_space<vmem>>, vector<16x16xbf16>
    %11 = arith.truncf %8 : vector<16x128xf32> to vector<16x128xbf16>
    %cst_7 = arith.constant dense<0.000000e+00> : vector<16x128xf32>
    %12 = tpu.matmul %10, %11, %cst_7 {dimension_numbers = #tpu.dot_dimension_numbers<[1], [0], [0], [1], [0, 0, 1, 1], [], []>} : vector<16x16xbf16>, vector<16x128xbf16>, vector<16x128xf32> -> vector<16x128xf32>
    %13 = arith.addf %9, %12 : vector<16x128xf32>
    %c0_8 = arith.constant 0 : index
    %c0_9 = arith.constant 0 : index
    %14 = vector.load %arg7[%c0_8, %c0_9] : memref<16x128xf32, #tpu.memory_space<vmem>>, vector<16x128xf32>
    tpu.vector_store %arg7[%c0_8, %c0_9], %13 {strides = array<i32>} : memref<16x128xf32, #tpu.memory_space<vmem>>, vector<16x128xf32>,
    %c0_i32_10 = arith.constant 0 : i32
    %15 = arith.cmpi eq, %arg1, %c0_i32_10 : i32
    %16 = arith.extui %15 : i1 to i32
    %c0_i32_11 = arith.constant 0 : i32
    %17 = arith.cmpi ne, %16, %c0_i32_11 : i32
    scf.if %17 {
      %c0_12 = arith.constant 0 : index
      %c0_13 = arith.constant 0 : index
      %18 = vector.load %arg7[%c0_12, %c0_13] : memref<16x128xf32, #tpu.memory_space<vmem>>, vector<16x128xf32>
      %c0_14 = arith.constant 0 : index
      %c0_15 = arith.constant 0 : index
      %19 = vector.load %arg5[%c0_14, %c0_15] : memref<1x128xf32, #tpu.memory_space<vmem>>, vector<1x128xf32>
      %20 = vector.broadcast %19 : vector<1x128xf32> to vector<16x128xf32>
      %21 = arith.addf %18, %20 : vector<16x128xf32>
      %cst_16 = arith.constant 0.000000e+00 : f32
      %22 = vector.broadcast %cst_16 : f32 to vector<16x128xf32>
      %23 = arith.cmpf ogt, %21, %22 : vector<16x128xf32>
      %cst_17 = arith.constant 0.00999999977 : f32
      %24 = vector.broadcast %cst_17 : f32 to vector<16x128xf32>
      %25 = arith.mulf %24, %21 : vector<16x128xf32>
      %26 = arith.select %23, %21, %25 : vector<16x128xi1>, vector<16x128xf32>
      %27 = arith.truncf %26 : vector<16x128xf32> to vector<16x128xbf16>
      %c0_18 = arith.constant 0 : index
      %c0_19 = arith.constant 0 : index
      %28 = vector.load %arg6[%c0_18, %c0_19] : memref<16x128xbf16, #tpu.memory_space<vmem>>, vector<16x128xbf16>
      tpu.vector_store %arg6[%c0_18, %c0_19], %27 {strides = array<i32>} : memref<16x128xbf16, #tpu.memory_space<vmem>>, vector<16x128xbf16>,
    } else {
    }
    return
  }
  func.func @transform_0(%arg0: i32, %arg1: i32) -> (i32, i32) {
    %c0_i32 = arith.constant 0 : i32
    return %arg0, %arg1 : i32, i32
  }
  func.func @transform_1(%arg0: i32, %arg1: i32) -> (i32, i32) {
    %c0_i32 = arith.constant 0 : i32
    %c0_i32_0 = arith.constant 0 : i32
    %c0_i32_1 = arith.constant 0 : i32
    return %c0_i32, %c0_i32_0 : i32, i32
  }
  func.func @transform_2(%arg0: i32, %arg1: i32) -> (i32, i32) {
    %c0_i32 = arith.constant 0 : i32
    %c0_i32_0 = arith.constant 0 : i32
    %c0_i32_1 = arith.constant 0 : i32
    return %c0_i32, %c0_i32_0 : i32, i32
  }
  func.func @transform_3(%arg0: i32, %arg1: i32) -> (i32, i32) {
    %c0_i32 = arith.constant 0 : i32
    %c0_i32_0 = arith.constant 0 : i32
    %c0_i32_1 = arith.constant 0 : i32
    return %c0_i32, %c0_i32_0 : i32, i32
  }
  func.func @transform_4(%arg0: i32, %arg1: i32) -> (i32, i32) {
    %c0_i32 = arith.constant 0 : i32
    %c0_i32_0 = arith.constant 0 : i32
    return %arg0, %c0_i32 : i32, i32
  }
}

</mosaic_0001>

<bundles_post_ra>
// kernel: tpu_custom_call.1
= control target key start
LH: loop header
LB: loop body
LE: loop exit
PB: predicated region body
PF: predicated region fallthrough
CT: control target
= control target key end

     0   :  { %9 = vsyncpa [#allocation4], 0  ;;  %s461_s0 = inlined_call_operand.hbm [shape: bf16[16,16], index: 0, kind: input, shape index: {}]   ;;  %s462_s1 = inlined_call_operand.hbm [shape: bf16[16,128], index: 1, kind: input, shape index: {}]   ;;  %s463_s2 = inlined_call_operand.hbm [shape: bf16[128,128], index: 2, kind: input, shape index: {}]   ;;  %s464_s3 = inlined_call_operand.vmem [shape: f32[1,128], index: 3, kind: input, shape index: {}]   ;;  %s465_s4 = inlined_call_operand.hbm [shape: bf16[16,128], index: 4, kind: output, shape index: {}]  }
   0x1   :  { %10 = vsyncpa [#allocation7], 0 }
   0x2   :  { %11 = vsyncpa [#allocation5], 0  ;;  %s29_s17 = sshll.u32 %s462_s1, 4  ;;  %s403_s18 = smov [#allocation6]   ;;  %s30_s17 = int_to_ptr.hbm [resolvable:$true] %s29_s17 }
   0x3   :  { %s31_s19 = sshll.u32 %s403_s18, 4  ;;  %s16_s22 = sshll.u32 %s461_s0, 4  ;;  %s32_s19 = int_to_ptr.vmem [resolvable:$true] %s31_s19  ;;  %s17_s22 = int_to_ptr.hbm [resolvable:$true] %s16_s22 }
   0x4   :  { %s404_s23 = smov 64   ;;  %s405_s24 = smov 4  }
   0x5   :  { %37 = dma.hbm_to_vmem [thread:$0]  %s30_s17, 128, %s32_s19, [#allocation7], %s404_s23, %s404_s23, %s405_s24  }
   0x6   :  { %s406_s25 = smov [#allocation3]   ;;  %s42_s1 = sshll.u32 %s463_s2, 4  ;;  %s43_s1 = int_to_ptr.hbm [resolvable:$true] %s42_s1 }
   0x7   :  { %s18_s26 = sshll.u32 %s406_s25, 4  ;;  %s407_s0 = smov [#allocation8]   ;;  %s19_s26 = int_to_ptr.vmem [resolvable:$true] %s18_s26 }
   0x8   :  { %24 = dma.hbm_to_vmem [thread:$0]  %s17_s22, 128, %s19_s26, [#allocation4], %s404_s23, %s404_s23, %s405_s24  }
   0x9   :  { %s44_s29 = sshll.u32 %s407_s0, 4  ;;  %s45_s29 = int_to_ptr.vmem [resolvable:$true] %s44_s29 }
   0xa   :  { %50 = dma.hbm_to_vmem [thread:$0]  %s43_s1, 1024, %s45_s29, [#allocation7], %s404_s23, %s404_s23, %s405_s24  }
   0xb   :  { %397 = dma.done.wait [#allocation4], 128  }
   0xc   :  { %398 = vsyncadd [#allocation4], 4294967168 }
   0xd   :  { %399 = dma.done.wait [#allocation7], 1152  }
   0xe   :  { %400 = vsyncadd [#allocation7], 4294966144  ;;  %v287_v0 = vld [vmem:[#allocation8 + $0x38] sm:$0xff]  ;;  %v286_v1 = vld [vmem:[#allocation8 + $0x30] sm:$0xff]  ;;  %vm173_vm0 = vcmask 130048   ;;  %s408_s5 = smov [#allocation9]  }
   0xf   :  { %149 = vmatpush.bf16.msra.mxu0 %v287_v0  ;;  %v285_v2 = vld [vmem:[#allocation8 + $0x28] sm:$0xff]  ;;  %v284_v3 = vld [vmem:[#allocation8 + $0x20] sm:$0xff]  ;;  %v283_v4 = vld [vmem:[#allocation8 + $0x18] sm:$0xff]  ;;  %s220_s6 = sshll.u32 %s408_s5, 4  ;;  %s222_s9 = sshll.u32 %s465_s4, 4  ;;  %s221_s6 = int_to_ptr.vmem [resolvable:$true] %s220_s6  ;;  %s223_s9 = int_to_ptr.hbm [resolvable:$true] %s222_s9 }
  0x10   :  { %v282_v5 = vld [vmem:[#allocation8 + $0x10] sm:$0xff]  ;;  %v281_v6 = vld [vmem:[#allocation8 + $0x8] sm:$0xff]  ;;  %v280_v7 = vld [vmem:[#allocation8] sm:$0xff] }
  0x11   :  { %v279_v8 = vld [vmem:[#allocation6] sm:$0xff]  ;;  %v288_v12 = vld [vmem:[#allocation3] sm:$0xff] }
  0x12   :  { %v300_v14 = vld [vmem:[%s464_s3] ss:$0 sm:$0xff] }
  0x13   :  { %150 = vmatpush.bf16.msra.mxu0 %v286_v1 }
  0x17   :  { %151 = vmatpush.bf16.msra.mxu0 %v285_v2 }
  0x1b   :  { %152 = vmatpush.bf16.msra.mxu0 %v284_v3 }
  0x1f   :  { %153 = vmatpush.bf16.msra.mxu0 %v283_v4 }
  0x23   :  { %154 = vmatpush.bf16.msra.mxu0 %v282_v5 }
  0x27   :  { %155 = vmatpush.bf16.msra.mxu0 %v281_v6 }
  0x2b   :  { %156 = vmatpush.bf16.msra.mxu0 %v280_v7 }
  0x2e   :  { %157 = vmatmul.bf16.vlgmr.msra.gmra.mxu0 %v279_v8 }
  0xab   :  { %v158_v9 = vpop.f32.mrf.mxu0 }
  0xb3   :  { %v160_v10 = vpop.f32.mrf.mxu0 }
  0xb4   :  { %v167_v11 = vpack.c.bf16 %v160_v10, %v158_v9 }
  0xb6   :  { %184 = vmatpush.bf16.msra.mxu1 %v167_v11 }
  0xb9   :  { %278 = vmatmul.msk.bf16.vlgmr.msra.gmra.mxu1 %vm173_vm0, %v288_v12 }
 0x136   :  { %v186_v13 = vpop.f32.mrf.mxu1 }
 0x137   :  { %v204_v15 = vadd.f32 %v300_v14, %v186_v13 }
 0x139   :  { %v208_v17 = vmul.f32 0.01, %v204_v15  ;;  %vm206_vm1 = vcmp.gt.f32.partialorder %v204_v15, 0.0 }
 0x13b   :  { %v210_v20 = vsel %vm206_vm1, %v204_v15, %v208_v17 }
 0x13e   :  { %v188_v16 = vpop.f32.mrf.mxu1 }
 0x13f   :  { %v205_v18 = vadd.f32 %v300_v14, %v188_v16 }
 0x141   :  { %vm207_vm2 = vcmp.gt.f32.partialorder %v205_v18, 0.0  ;;  %v209_v19 = vmul.f32 0.01, %v205_v18 }
 0x143   :  { %v211_v21 = vsel %vm207_vm2, %v205_v18, %v209_v19 }
 0x144   :  { %v292_v22 = vpack.c.bf16 %v211_v21, %v210_v20 }
 0x146   :  { %293 = vst [vmem:[#allocation9] sm:$0xff] %v292_v22  }
 0x147   :  { %228 = dma.vmem_to_hbm [thread:$0]  %s221_s6, 128, %s223_s9, [#allocation5], %s404_s23, %s404_s23, %s405_s24  }
 0x148   :  { %401 = dma.done.wait [#allocation5], 128  }
 0x149   :  { %402 = vsyncadd [#allocation5], 4294967168 }
 0x14a   :  { %233 = vsyncpa [#allocation4], 1 }
 0x14b   :  { %234 = vsyncpa [#allocation7], 1 }
 0x14c   :  { %235 = vsyncpa [#allocation5], 1 }

</bundles_post_ra>
